<compile_context>
chip_gen: v7x
topology: tpu7x:2x2x1
jax: 0.10.0
libtpu: 0.0.40
codegen_flags: <defaults>
</compile_context>

<pallas_src>
import math

import jax
import jax.numpy as jnp
from jax import lax
from jax.experimental import pallas as pl
from jax.experimental.pallas import tpu as pltpu


def _round_up(x, m):
    return ((x + m - 1) // m) * m


def _discriminator_kernel(a_ref, f_ref, o_ref):
    # a_ref: (pack, h_packed) resident folded matrix (block-diag copies of v)
    # f_ref: (tile_p, h_packed) streamed packed-feature tile
    # o_ref: (1, pack, tile_p) lane-dense output tile
    a = a_ref[...]
    f = f_ref[...]
    if f.dtype != a.dtype:
        f = f.astype(a.dtype)
    # (pack, K) x (tile_p, K) contracting K -> (pack, tile_p) on the MXU,
    # f32 accumulation.
    res = lax.dot_general(
        a, f, (((1,), (1,)), ((), ())), preferred_element_type=jnp.float32
    )
    o_ref[...] = res[None].astype(o_ref.dtype)


def discriminator_forward(features, weight, summary, *, tile_rows=None):
    """features: (N, H), weight: (H, H), summary: (H,) -> (N,)"""
    n, h = features.shape
    assert weight.shape == (h, h)
    assert summary.shape == (h,)
    out_dtype = features.dtype

    # Hoist v = W @ summary (tiny HxH matvec); pin f32 accumulation so
    # low-precision params don't lose it to XLA defaults.
    v = jnp.dot(
        weight.astype(jnp.float32),
        summary.astype(jnp.float32),
        preferred_element_type=jnp.float32,
    )  # (H,)

    # Lane packing factor.
    if h < 128 and 128 % h == 0:
        pack = 128 // h
    else:
        pack = 1
    h_packed = pack * h

    n_main = (n // pack) * pack
    n_packed = n_main // pack

    if n_packed == 0:
        # Fewer rows than one packed group: plain XLA is the right tool.
        return jnp.dot(features.astype(jnp.float32), v).astype(out_dtype)

    # Keep the streamed matmul in the features' own float dtype (bf16 stays
    # bf16 on the MXU with an f32 accumulator); non-floats go through f32.
    if jnp.issubdtype(features.dtype, jnp.floating):
        compute_dtype = features.dtype
    else:
        compute_dtype = jnp.float32

    # Fold v and the per-group segment-sum into one tiny resident matrix:
    #   A[g, l] = v[l - g*h]  if  g*h <= l < (g+1)*h  else 0
    # so (A @ packed_row^T)[g] recovers (features @ v) for original row
    # p*pack + g.
    a_mat = jnp.kron(jnp.eye(pack, dtype=jnp.float32), v.reshape(1, h))
    a_mat = a_mat.astype(compute_dtype)

    feat_main = features if n_main == n else features[:n_main]
    # Row-major contiguous reshape: (n_main, H) -> (n_packed, pack*H). Free.
    feat_packed = feat_main.reshape(n_packed, h_packed)

    itemsize = features.dtype.itemsize
    sublane = {4: 8, 2: 16, 1: 32}.get(itemsize, 8)
    # Real VMEM bytes per packed row (minor dim padded to 128 lanes).
    lane_row_bytes = _round_up(h_packed, 128) * itemsize

    if tile_rows is None:
        # ~4 MiB per feature buffer -> 2 double-buffered tiles (+ tiny
        # lane-dense output buffers + A) stay under v5e's 16 MiB default
        # scoped VMEM and v7x's 32 MiB, while being large enough (32K
        # original rows at H=32 f32) to amortize per-step overhead.
        tile_p = (4 * 1024 * 1024) // max(lane_row_bytes, 1)
    else:
        tile_p = max(1, tile_rows // pack)

    tile_p = min(tile_p, _round_up(n_packed, 128))
    if tile_p >= 128:
        tile_p = (tile_p // 128) * 128  # multiple of 128 -> unmasked stores
    else:
        tile_p = max(sublane, _round_up(tile_p, sublane))

    num_tiles = pl.cdiv(n_packed, tile_p)

    cost = pl.CostEstimate(
        flops=2 * num_tiles * tile_p * h_packed * pack,
        transcendentals=0,
        bytes_accessed=(
            n_main * h * itemsize
            + num_tiles * pack * tile_p * 4
            + pack * h_packed * itemsize
        ),
    )

    out = pl.pallas_call(
        _discriminator_kernel,
        out_shape=jax.ShapeDtypeStruct((num_tiles, pack, tile_p), jnp.float32),
        grid_spec=pltpu.PrefetchScalarGridSpec(
            num_scalar_prefetch=0,
            grid=(num_tiles,),
            in_specs=[
                pl.BlockSpec((pack, h_packed), lambda i: (0, 0)),    # A resident
                pl.BlockSpec((tile_p, h_packed), lambda i: (i, 0)),  # features
            ],
            out_specs=pl.BlockSpec((1, pack, tile_p), lambda i: (i, 0, 0)),
        ),
        compiler_params=pltpu.CompilerParams(
            dimension_semantics=("parallel",),
        ),
        cost_estimate=cost,
    )(a_mat, feat_packed)

    # (num_tiles, pack, tile_p) -> original row order p*pack + g; garbage
    # columns from the partial boundary tile land past n_main and are sliced.
    out_flat = out.transpose(0, 2, 1).reshape(-1)[:n_main]

    if n_main != n:
        # Rows left over from lane packing (< pack of them): tiny XLA matvec.
        tail = jnp.dot(features[n_main:].astype(jnp.float32), v)
        out_flat = jnp.concatenate([out_flat, tail])

    return out_flat.astype(out_dtype)


def init_discriminator_params(key, n_hidden, dtype=jnp.float32):
    # Matches reset_parameters(): uniform(-1/sqrt(H), 1/sqrt(H))
    bound = 1.0 / math.sqrt(n_hidden)
    weight = jax.random.uniform(
        key, (n_hidden, n_hidden), dtype=dtype, minval=-bound, maxval=bound
    )
    return weight


if __name__ == "__main__":
    n_hidden = 32    # H
    n_nodes = 300    # N -- deliberately not a multiple of the packed tile size

    key = jax.random.PRNGKey(0)
    k_w, k_f, k_s = jax.random.split(key, 3)

    weight = init_discriminator_params(k_w, n_hidden)
    features = jax.random.normal(k_f, (n_nodes, n_hidden), dtype=jnp.float32)
    summary = jax.random.normal(k_s, (n_hidden,), dtype=jnp.float32)

    # Force a small tile so the grid has several steps and a partial tail tile.
    out = discriminator_forward(features, weight, summary, tile_rows=128)
    out = jax.block_until_ready(out)

    # Reference check in plain JAX (same math as the torch.matmul chain).
    ref = features @ (weight @ summary)
    assert out.shape == (n_nodes,)
    assert jnp.allclose(out, ref, rtol=1e-5, atol=1e-5), "mismatch vs reference"

    print("KERNEL_OK")
</pallas_src>

<mosaic_0001>
module attributes {stable_mosaic.version = 11 : i64} {
  func.func @_discriminator_kernel(%arg0: i32, %arg1: memref<4x128xf32, #tpu.memory_space<vmem>>, %arg2: memref<32x128xf32, #tpu.memory_space<vmem>>, %arg3: memref<1x4x32xf32, #tpu.memory_space<vmem>>) attributes {dimension_semantics = [#tpu.dimension_semantics<parallel>], iteration_bounds = array<i64: 3>, scalar_prefetch = 0 : i64, scratch_operands = 0 : i64, tpu.core_type = #tpu.core_type<tc>, window_params = [{pipeline_mode = #tpu.pipeline_mode<synchronous>, transform_indices = @transform_0, window_bounds = array<i64: 4, 128>}, {transform_indices = @transform_1, window_bounds = array<i64: 32, 128>}, {transform_indices = @transform_2, window_bounds = array<i64: 1, 4, 32>}]} {
    %c0 = arith.constant 0 : index
    %c0_0 = arith.constant 0 : index
    %0 = vector.load %arg1[%c0, %c0_0] : memref<4x128xf32, #tpu.memory_space<vmem>>, vector<4x128xf32>
    %c0_1 = arith.constant 0 : index
    %c0_2 = arith.constant 0 : index
    %1 = vector.load %arg2[%c0_1, %c0_2] : memref<32x128xf32, #tpu.memory_space<vmem>>, vector<32x128xf32>
    %cst = arith.constant dense<0.000000e+00> : vector<4x32xf32>
    %2 = tpu.matmul %0, %1, %cst {dimension_numbers = #tpu.dot_dimension_numbers<[1], [1], [0], [0], [0, 0, 1, 0], [], []>} : vector<4x128xf32>, vector<32x128xf32>, vector<4x32xf32> -> vector<4x32xf32>
    %3 = vector.shape_cast %2 : vector<4x32xf32> to vector<1x4x32xf32>
    %c0_3 = arith.constant 0 : index
    %c0_4 = arith.constant 0 : index
    %c0_5 = arith.constant 0 : index
    %4 = vector.load %arg3[%c0_3, %c0_4, %c0_5] : memref<1x4x32xf32, #tpu.memory_space<vmem>>, vector<1x4x32xf32>
    tpu.vector_store %arg3[%c0_3, %c0_4, %c0_5], %3 {strides = array<i32>} : memref<1x4x32xf32, #tpu.memory_space<vmem>>, vector<1x4x32xf32>,
    return
  }
  func.func @transform_0(%arg0: i32) -> (i32, i32) {
    %c0_i32 = arith.constant 0 : i32
    %c0_i32_0 = arith.constant 0 : i32
    %c0_i32_1 = arith.constant 0 : i32
    return %c0_i32, %c0_i32_0 : i32, i32
  }
  func.func @transform_1(%arg0: i32) -> (i32, i32) {
    %c0_i32 = arith.constant 0 : i32
    %c0_i32_0 = arith.constant 0 : i32
    return %arg0, %c0_i32 : i32, i32
  }
  func.func @transform_2(%arg0: i32) -> (i32, i32, i32) {
    %c0_i32 = arith.constant 0 : i32
    %c0_i32_0 = arith.constant 0 : i32
    %c0_i32_1 = arith.constant 0 : i32
    return %arg0, %c0_i32, %c0_i32_0 : i32, i32, i32
  }
}

</mosaic_0001>

<bundles_post_ra>
// kernel: tpu_custom_call.1
= control target key start
LH: loop header
LB: loop body
LE: loop exit
PB: predicated region body
PF: predicated region fallthrough
CT: control target
= control target key end

     0   :  { %7 = vsyncpa [#allocation3], 0  ;;  %s804_s0 = inlined_call_operand.hbm [shape: f32[4,128], index: 0, kind: input, shape index: {}]   ;;  %s805_s1 = inlined_call_operand.hbm [shape: f32[75,128], index: 1, kind: input, shape index: {}]   ;;  %s806_s2 = inlined_call_operand.hbm [shape: f32[3,4,32], index: 2, kind: output, shape index: {}]  }
   0x1   :  { %8 = vsyncpa [#allocation6], 0 }
   0x2   :  { %10 = vsyncpa [#allocation6 + $0x1], 0 }
   0x3   :  { %11 = vsyncpa [#allocation4], 0 }
   0x4   :  { %13 = vsyncpa [#allocation4 + $0x1], 0  ;;  %s608_s9 = smov 0   ;;  %s610_s10 = smov 0  }
   0x5   :  { %s612_s11 = smov 0   ;;  %s614_s12 = smov 0  }
   0x6 LB: > { %s629_s13 = sadd.s32 4294967295, %s583_s12   ;;  %s359_s14 = sadd.s32 4294967294, %s583_s12   ;;  %s583_s12 = sphi %s614_s12, %s827_s12   ;;  %s579_s11 = sphi %s612_s11, %s826_s11   ;;  %s575_s10 = sphi %s610_s10, %s825_s10   ;;  %s571_s9 = sphi %s608_s9, %s824_s9  }
   0x7   : > { %s633_s15 = sadd.s32 1, %s583_s12   ;;  %s47_s16 = sadd.s32 1, %s579_s11 }
   0x8   : > { %s44_s17 = ssub.s32 %s583_s12, %s633_s15  ;;  %p54_p0 = scmp.ne.s32.totalorder %s579_s11, %s575_s10 }
   0x9   : > { %p45_p1 = scmp.eq.s32.totalorder %s44_s17, 0  ;;  %p55_p2 = scmp.eq.s32.totalorder %s583_s12, 0 }
   0xa   : > { %p60_p3 = scmp.ne.s32.totalorder %s575_s10, %s571_s9  ;;  %p807_p4 = scmp.eq.s32.totalorder %s629_s13, 0 }
   0xb   : > { %s645_s18 = scalar_select %p45_p1, %s579_s11, %s47_s16  }
   0xc   : > { %p647_p5 = por %p55_p2, %p54_p0  ;;  %p653_p6 = por %p807_p4, %p60_p3 }
   0xd   : > { %p84_p7 = scmp.eq.s32.totalorder %s629_s13, 2  ;;  %p90_p8 = scmp.eq.s32.totalorder %s359_s14, 2 }
   0xe   : > { %s811_s19 = scalar_select %p647_p5, 1, 0 }
   0xf   : > { %s812_s20 = scalar_select %p653_p6, 1, 0 }
  0x10   : > { %p360_p9 = scmp.ge.s32.totalorder %s583_s12, 1  ;;  %p97_p10 = scmp.lt.s32.totalorder %s583_s12, 4 }
  0x11   : > { %p660_p11 = por %p84_p7, %p54_p0  ;;  %p664_p12 = por %p90_p8, %p60_p3 }
  0x12   : > { %p668_p13 = pnand %p360_p9, %p97_p10  ;;  %s585_s24 = smov [#allocation2]  }
  0x13   : > { %s813_s21 = scalar_select %p660_p11, 1, 0 }
  0x14   : > { %s814_s22 = scalar_select %p664_p12, 1, 0 }
  0x15   : > { %s815_s23 = scalar_select %p668_p13, 1, 0 }
  0x16   : > { %p408_p1 = pneg %p668_p13  ;;  %s110_s25 = sshll.u32 %s585_s24, 4  ;;  %s111_s25 = int_to_ptr.vmem [resolvable:$true] %s110_s25 }
  0x17   : > { %s457_s29 = scalar_lea.hbm %s804_s0, 64 }
  0x18   : > { %p676_p2 = pnand %p408_p1, %p807_p4  ;;  %p458_p0 = scmp.ne.s32.totalorder %s804_s0, %s457_s29 }
  0x19   : > { %p464_p9 = scmp.lt.u32.totalorder %s457_s29, %s804_s0 }
  0x1a   : > { %p459_p3 = pneg %p676_p2 }
  0x1c   : > { %p460_p7 = pnand %p459_p3, %p458_p0 }
  0x1e   : > { %p461_p8 = pneg %p460_p7 }
  0x20   : > { %p466_p10 = pnand %p464_p9, %p461_p8 }
  0x22   : > { %469 = shalt.err (!%p466_p10)
}
  0x23   : > { %s470_s6 = scalar_lea.vmem %s111_s25, 64  ;;  %p478_p11 = scmp.lt.s32.totalorder %s111_s25, %s111_s25 }
  0x24   : > { %p471_p1 = scmp.ne.s32.totalorder %s111_s25, %s470_s6  ;;  %p479_p6 = scmp.lt.s32.totalorder %s470_s6, %s470_s6 }
  0x26   : > { %p473_p4 = pnand %p471_p1, %p459_p3  ;;  %p480_p13 = por %p479_p6, %p478_p11 }
  0x28   : > { %p474_p12 = pneg %p473_p4 }
  0x2a   : > { %p481_p5 = pnand %p480_p13, %p474_p12 }
  0x2c   : > { %484 = shalt.err (!%p481_p5)
}
  0x2d   : > { %411 = dma.hbm_to_vmem [thread:$0]  (!%p676_p2), %s804_s0, 64, %s111_s25, [#allocation3]  }
  0x2e   : > { %p362_p0 = scmp.ge.s32.totalorder %s583_s12, 3 }
  0x2f   : > { %p817_p7 = scmp.ne.s32.totalorder (!%p362_p0), %s811_s19, 0 }
  0x30   : > { %117 = sbr.rel (%p362_p0) target bundleno = 90 (0x5a), region = 20 }
  0x37   : > { %120 = sbr.rel (!%p817_p7) target bundleno = 90 (0x5a), region = 24  ;;  %s121_s14 = sand.u32 (%p817_p7), 1, %s579_s11  }
  0x38   : > { %s364_s16 = sshll.u32 (%p817_p7), %s583_s12, 2  ;;  %s363_s17 = sshll.u32 (%p817_p7), %s121_s14, 5 }
  0x39   : > { %s127_s24 = ssub.s32 (%p817_p7), 10, %s364_s16  ;;  %s704_s28 = scalar_lea.sflag (%p817_p7), [#allocation6], %s121_s14 }
  0x3a   : > { %p128_p4 = scmp.lt.s32.totalorder (%p817_p7), %s127_s24, 4  ;;  %s125_s25 = scalar_lea.vmem (%p817_p7), [#allocation5], %s363_s17 }
  0x3e   : > { %s829_s24 = smov (!%p128_p4, %s127_s24), 4 }
  0x3f   : > { %s701_s27 = sshll.u32 %s829_s24, 7 }
  0x40   : > { %s132_s26 = ssub.s32 512, %s701_s27 }
  0x41   : > { %133 = vsyncadd %s704_s28, %s132_s26  ;;  %p366_p5 = scmp.ne.s32.totalorder %s701_s27, 0  ;;  %s378_s19 = sshll.u32 %s583_s12, 9 }
  0x42   : > { %s712_s3 = scalar_lea.hbm %s805_s1, %s378_s19  ;;  %s138_s4 = sshll.u32 %s125_s25, 4  ;;  %s714_s4 = int_to_ptr.vmem [resolvable:$true] %s138_s4 }
  0x43   : > { %s485_s5 = scalar_lea.hbm %s712_s3, %s701_s27  ;;  %s489_s8 = scalar_lea.hbm %s805_s1, 1280 }
  0x44   : > { %p486_p6 = scmp.ne.s32.totalorder %s712_s3, %s485_s5  ;;  %p490_p13 = scmp.lt.u32.totalorder %s712_s3, %s805_s1 }
  0x45   : > { %p491_p2 = scmp.lt.u32.totalorder %s489_s8, %s485_s5  ;;  %p493_p8 = scmp.lt.u32.totalorder %s485_s5, %s712_s3 }
  0x46   : > { %p487_p11 = pnand %p486_p6, %p366_p5 }
  0x47   : > { %p492_p3 = por %p491_p2, %p490_p13 }
  0x48   : > { %p488_p12 = pneg %p487_p11 }
  0x49   : > { %p494_p9 = por %p493_p8, %p492_p3 }
  0x4b   : > { %p495_p10 = pnand %p494_p9, %p488_p12 }
  0x4d   : > { %498 = shalt.err (!%p495_p10)
}
  0x4e   : > { %s499_s17 = scalar_lea.vmem %s714_s4, %s701_s27  ;;  %s586_s24 = smov [#allocation5]  }
  0x4f   : > { %p500_p1 = scmp.ne.s32.totalorder %s714_s4, %s499_s17  ;;  %s503_s26 = sshll.u32 %s586_s24, 4  ;;  %s504_s26 = int_to_ptr.vmem [resolvable:$false] %s503_s26 }
  0x50   : > { %s505_s25 = scalar_lea.vmem %s504_s26, 1024  ;;  %p506_p4 = scmp.lt.s32.totalorder %s714_s4, %s504_s26 }
  0x51   : > { %p501_p0 = pnand %p500_p1, %p366_p5  ;;  %p507_p6 = scmp.lt.s32.totalorder %s505_s25, %s499_s17 }
  0x53   : > { %p502_p7 = pneg %p501_p0  ;;  %p508_p11 = por %p507_p6, %p506_p4 }
  0x55   : > { %p509_p13 = pnand %p508_p11, %p502_p7 }
  0x57   : > { %512 = shalt.err (!%p509_p13)
}
  0x58   : > { %s587_s19 = smov 128   ;;  %s588_s29 = smov 8  }
  0x59   : > { %144 = dma.hbm_to_vmem [thread:$0]  (%p366_p5), %s712_s3, %s701_s27, %s714_s4, %s704_s28, %s587_s19, %s587_s19, %s588_s29  }
  0x5a PF: > { %p818_p12 = scmp.ne.s32.totalorder %s815_s23, 0 }
  0x5b   : > { %p819_p2 = scmp.eq.s32.totalorder (!%p818_p12), %s629_s13, 0 }
  0x5c   : > { %150 = sbr.rel (%p818_p12) target bundleno = 348 (0x15c), region = 28 }
  0x63   : > { %558 = dma.done.wait (%p819_p2), [#allocation3], 64   ;;  %p820_p3 = pmov %p819_p2 }
  0x64   : > { %s748_s30 = sand.u32 1, %s575_s10   ;;  %p821_p5 = scmp.ne.s32.totalorder %s812_s20, 0 }
  0x65   : > { %560 = vsyncadd (%p820_p3), [#allocation3], 4294967232  ;;  %s372_s5 = sshll.u32 %s748_s30, 5  ;;  %s157_s6 = scalar_lea.sflag [#allocation6], %s748_s30 }
  0x66   : > { %s160_s27 = scalar_lea.vmem [#allocation5], %s372_s5 }
  0x67   : > { %562 = dma.done.wait (%p821_p5), %s157_s6, 512  }
  0x68   : > { %564 = vsyncadd (%p821_p5), %s157_s6, 4294966784  ;;  %v589_v0 = vmov 0.0|0.0   ;;  %vm590_vm0 = vmmov 0   ;;  %v591_v1 = vmov 0.0   ;;  %v187_v2 = vld [vmem:[%s160_s27] sm:$0xff]  ;;  %v188_v3 = vld [vmem:[%s160_s27 + $0x8] sm:$0xff] }
  0x69   : > { %395 = vmatprep.subr.bf16.mxu0 %v589_v0  ;;  %392 = vmatprep.mubr.msk.f32.mxu0 %vm590_vm0, %v591_v1  ;;  %v396_v4 = vpack.c.bf16 %v188_v3, %v187_v2  ;;  %v189_v5 = vld [vmem:[%s160_s27 + $0x10] sm:$0xff]  ;;  %v190_v6 = vld [vmem:[%s160_s27 + $0x18] sm:$0xff]  ;;  %s373_s20 = sshll.u32 %s748_s30, 2  ;;  %s375_s23 = sshll.u32 %s629_s13, 6  ;;  %vm261_vm1 = vcmask 257024  }
  0x6a   : > { %v399_v7 = vpack.c.bf16 %v190_v6, %v189_v5  ;;  %v186_v8 = vld [vmem:[#allocation2] sm:$0xf]  ;;  %s180_s28 = scalar_lea.vmem [#allocation7], %s373_s20  ;;  %s761_s8 = scalar_lea.hbm %s806_s2, %s375_s23 }
  0x6b   : > { %397 = vmatpush3.bf16.xpose.msra.mxu0 %v396_v4  ;;  %s277_s3 = sshll.u32 %s180_s28, 4  ;;  %s264_s14 = scalar_lea.sflag [#allocation4], %s748_s30  ;;  %s763_s3 = int_to_ptr.vmem [resolvable:$true] %s277_s3 }
  0x6c   : > { %398 = vmatprep.subr.bf16.mxu0 %v589_v0  ;;  %s513_s16 = scalar_lea.vmem %s763_s3, 64  ;;  %p822_p9 = scmp.ne.s32.totalorder %s813_s21, 0 }
  0x6d   : > { %p514_p8 = scmp.ne.s32.totalorder %s763_s3, %s513_s16  ;;  %s592_s13 = smov [#allocation7]  }
  0x6e   : > { %s517_s17 = sshll.u32 %s592_s13, 4  ;;  %s518_s17 = int_to_ptr.vmem [resolvable:$false] %s517_s17 }
  0x6f   : > { %p515_p10 = pnand %p514_p8, %p822_p9  ;;  %s519_s24 = scalar_lea.vmem %s518_s17, 128 }
  0x70   : > { %p520_p0 = scmp.lt.s32.totalorder %s763_s3, %s518_s17  ;;  %p521_p7 = scmp.lt.s32.totalorder %s519_s24, %s513_s16 }
  0x71   : > { %p516_p1 = pneg %p515_p10 }
  0x72   : > { %p522_p4 = por %p521_p7, %p520_p0 }
  0x73   : > { %400 = vmatpush3.bf16.xpose.msra.mxu0 %v399_v7 }
  0x74   : > { %p523_p6 = pnand %p522_p4, %p516_p1 }
  0x7a   : > { %393 = vmatmul.mubr.f32.vlgmr.msra.gmra.mrb[0].mxu0 %v186_v8 }
 0x14d   : > { %v257_v9 = vpop.f32.mrb[0].mxu0 }
 0x14e   : > { %262 = vst.msk [vmem:[%s180_s28] sm:$0xf] %vm261_vm1, %v257_v9  ;;  %v394_v10 = vpop.f32.mrb[1].mxu0 }
 0x14f   : > { %526 = shalt.err (!%p523_p6)
}
 0x150   : > { %s527_s26 = scalar_lea.hbm %s761_s8, 64  ;;  %s531_s29 = scalar_lea.hbm %s806_s2, 192 }
 0x151   : > { %p528_p11 = scmp.ne.s32.totalorder %s761_s8, %s527_s26  ;;  %p532_p2 = scmp.lt.u32.totalorder %s761_s8, %s806_s2 }
 0x152   : > { %p533_p3 = scmp.lt.u32.totalorder %s531_s29, %s527_s26  ;;  %p535_p8 = scmp.lt.u32.totalorder %s527_s26, %s761_s8 }
 0x153   : > { %p529_p13 = pnand %p528_p11, %p822_p9 }
 0x154   : > { %p534_p5 = por %p533_p3, %p532_p2 }
 0x155   : > { %p530_p12 = pneg %p529_p13 }
 0x156   : > { %p536_p10 = por %p535_p8, %p534_p5 }
 0x158   : > { %p537_p1 = pnand %p536_p10, %p530_p12 }
 0x15a   : > { %540 = shalt.err (!%p537_p1)
}
 0x15b   : > { %406 = dma.vmem_to_hbm [thread:$0]  (%p822_p9), %s763_s3, 64, %s761_s8, %s264_s14  }
 0x15c PF: > { %p418_p0 = scmp.ge.s32.totalorder %s583_s12, 2  ;;  %s289_s6 = sand.u32 1, %s571_s9  }
 0x15d   : > { %p823_p7 = scmp.ne.s32.totalorder %s814_s22, 0  ;;  %s290_s27 = scalar_lea.sflag [#allocation4], %s289_s6 }
 0x15f   : > { %p413_p4 = pnand %p418_p0, %p823_p7 }
 0x161   : > { %566 = dma.done.wait (!%p413_p4), %s290_s27, 64  }
 0x162   : > { %568 = vsyncadd (!%p413_p4), %s290_s27, 4294967232  ;;  %p16_p6 = scmp.ge.s32.totalorder %s633_s15, 5   ;;  %s824_s9 = smov %s575_s10 }
 0x163   : > { %s825_s10 = smov %s579_s11  ;;  %s826_s11 = smov %s645_s18 }
 0x164   : > { %s827_s12 = smov %s633_s15  ;;  %18 = sbr.rel (!%p16_p6) target bundleno = 6 (0x6), region = 78 }
 0x16b   :  { %295 = vsyncpa [#allocation3], 1 }
 0x16c   :  { %297 = vsyncpa [#allocation3 + $0x1], 1 }
 0x16d   :  { %298 = vsyncpa [#allocation6], 1 }
 0x16e   :  { %300 = vsyncpa [#allocation6 + $0x1], 1 }
 0x16f   :  { %301 = vsyncpa [#allocation4], 1 }
 0x170   :  { %303 = vsyncpa [#allocation4 + $0x1], 1 }

</bundles_post_ra>
